<compile_context>
chip_gen: v5e
topology: v5e:2x2
jax: 0.10.0
libtpu: 0.0.40
codegen_flags: <defaults>
</compile_context>

<pallas_src>
import jax
import jax.numpy as jnp
from jax import lax
from jax.experimental import pallas as pl
from jax.experimental.pallas import tpu as pltpu

_LANE = 128


def attack_mlp_kernel(x_ref,
                      w1_ref, b1_ref,
                      w2_ref, b2_ref,
                      w3_ref, b3_ref,
                      w4_ref, b4_ref,
                      o_ref):
    """Fused 4-layer MLP computed transposed (features x batch)."""
    # x arrives batch-major (tile, d_in) as it sits in HBM; cast (bf16 fast
    # path) to f32 so the MXU accumulates in full precision.
    x = x_ref[...].astype(jnp.float32)

    # Layer 1: contract the feature axis of W1 (d1, d_in) with x (tile, d_in)
    # -> h1^T of shape (d1, tile), i.e. W1 @ x.T without materializing x.T.
    h = lax.dot_general(w1_ref[...], x, (((1,), (1,)), ((), ())),
                        preferred_element_type=jnp.float32) + b1_ref[...]
    h = jnp.maximum(h, 0.0)

    # Layers 2-4 stay in the transposed (features, batch) layout; biases are
    # (out, 1) and broadcast over the lane (batch) axis.
    h = jnp.dot(w2_ref[...], h, preferred_element_type=jnp.float32) + b2_ref[...]
    h = jnp.maximum(h, 0.0)
    h = jnp.dot(w3_ref[...], h, preferred_element_type=jnp.float32) + b3_ref[...]
    h = jnp.maximum(h, 0.0)
    logits = jnp.dot(w4_ref[...], h, preferred_element_type=jnp.float32) + b4_ref[...]

    # Exact, stable sigmoid: one EUP tanh push (no approx reciprocal).
    o_ref[...] = (0.5 * jnp.tanh(0.5 * logits) + 0.5).astype(o_ref.dtype)


def init_attack_params(key, layer1_nodes, num_of_classes, dtype=jnp.float32):
    """nn.Linear default init U(-1/sqrt(in), 1/sqrt(in)).

    Weights are kept in torch (out_features, in_features) layout; biases as
    (out_features, 1) so they broadcast over the lane (batch) axis in-kernel.
    """
    dims = [layer1_nodes, layer1_nodes // 2, 32, 16, num_of_classes]
    params = []
    for i in range(4):
        key, kw, kb = jax.random.split(key, 3)
        fan_in, fan_out = dims[i], dims[i + 1]
        bound = fan_in ** -0.5
        w = jax.random.uniform(kw, (fan_out, fan_in), dtype, -bound, bound)
        b = jax.random.uniform(kb, (fan_out, 1), dtype, -bound, bound)
        params += [w, b]
    return params


def attack_forward(batch, params, *, tile_b=8192, input_dtype=None):
    """batch: (B, layer1_nodes). Returns sigmoid(fc4(relu(...))) with dim 1
    squeezed iff num_of_classes == 1 (matching torch .squeeze(dim=1)).

    tile_b: rows per grid step (lane-axis tile of the transposed output);
      must be a multiple of 128.  Default 8192 (2 MiB f32 input buffer,
      4 MiB double-buffered) amortizes the ~0.35us/step overhead while
      staying well inside v7x's 64 MiB VMEM / 32 MiB scoped default.
    input_dtype: optional cast for the streamed batch (e.g. jnp.bfloat16
      halves input HBM traffic; weights + accumulation stay f32).
    """
    assert tile_b % _LANE == 0, "tile_b must be a multiple of 128 (lane axis)"
    B, d_in = batch.shape
    num_classes = params[-1].shape[0]
    out_dtype = jnp.float32

    if input_dtype is not None and batch.dtype != input_dtype:
        batch = batch.astype(input_dtype)

    # Batch tile rides the output lane axis -> must be a 128-multiple; pad the
    # batch up to a tile multiple (pad rows are sliced off below).
    tile = min(tile_b, pl.cdiv(B, _LANE) * _LANE)
    num_tiles = pl.cdiv(B, tile)
    b_pad = num_tiles * tile
    if b_pad != B:
        batch = jnp.pad(batch, ((0, b_pad - B), (0, 0)))

    # Weights/biases: full-array blocks with constant index maps -> they stay
    # VMEM-resident across all batch tiles (no per-step re-DMA).
    param_specs = [pl.BlockSpec(p.shape, lambda i: (0, 0)) for p in params]

    out = pl.pallas_call(
        attack_mlp_kernel,
        out_shape=jax.ShapeDtypeStruct((num_classes, b_pad), out_dtype),
        grid=(num_tiles,),
        in_specs=[pl.BlockSpec((tile, d_in), lambda i: (i, 0))] + param_specs,
        # Output is (num_classes, batch): batch on the lane axis -> lane-dense,
        # unmasked stores.
        out_specs=pl.BlockSpec((num_classes, tile), lambda i: (0, i)),
        compiler_params=pltpu.CompilerParams(
            dimension_semantics=("parallel",)),
    )(batch, *params)

    out = out[:, :B]
    if num_classes == 1:
        return out[0]          # torch .squeeze(dim=1)
    return out.T               # back to (B, num_classes); tiny transpose


def reference_forward(batch, params):
    w1, b1, w2, b2, w3, b3, w4, b4 = params
    P = lax.Precision.HIGHEST
    x = batch.astype(jnp.float32)
    h = jnp.maximum(jnp.dot(x, w1.T, precision=P) + b1.T, 0.0)
    h = jnp.maximum(jnp.dot(h, w2.T, precision=P) + b2.T, 0.0)
    h = jnp.maximum(jnp.dot(h, w3.T, precision=P) + b3.T, 0.0)
    out = jax.nn.sigmoid(jnp.dot(h, w4.T, precision=P) + b4.T)
    if out.shape[1] == 1:
        out = out[:, 0]
    return out


if __name__ == "__main__":
    key = jax.random.PRNGKey(0)
    kx, kp, kx2, kp2, kx3 = jax.random.split(key, 5)

    layer1_nodes = 64

    # Test 1: small batch, 2 classes, single tile (batch padded 8 -> 128).
    x = jax.random.normal(kx, (8, layer1_nodes), jnp.float32)
    params = init_attack_params(kp, layer1_nodes, 2)
    out = jax.block_until_ready(attack_forward(x, params))
    ref = reference_forward(x, params)
    assert out.shape == ref.shape, (out.shape, ref.shape)
    assert jnp.allclose(out, ref, atol=5e-3, rtol=5e-3), "mismatch (test 1)"

    # Test 2: non-multiple-of-tile batch, 1 class -> exercises padding, the
    # multi-tile batch grid (tiny 128-row tile on purpose) and the squeeze path.
    x2 = jax.random.normal(kx2, (300, layer1_nodes), jnp.float32)
    params2 = init_attack_params(kp2, layer1_nodes, 1)
    out2 = jax.block_until_ready(attack_forward(x2, params2, tile_b=128))
    ref2 = reference_forward(x2, params2)
    assert out2.shape == ref2.shape, (out2.shape, ref2.shape)
    assert jnp.allclose(out2, ref2, atol=5e-3, rtol=5e-3), "mismatch (test 2)"

    # Test 3: bf16 input-cast fast path (halves streamed HBM bytes); compared
    # against a reference fed the same bf16-rounded input.
    x3 = jax.random.normal(kx3, (64, layer1_nodes), jnp.float32)
    out3 = jax.block_until_ready(
        attack_forward(x3, params, input_dtype=jnp.bfloat16))
    ref3 = reference_forward(x3.astype(jnp.bfloat16).astype(jnp.float32), params)
    assert out3.shape == ref3.shape, (out3.shape, ref3.shape)
    assert jnp.allclose(out3, ref3, atol=1e-2, rtol=1e-2), "mismatch (test 3)"

    print("KERNEL_OK")
</pallas_src>

<mosaic_0001>
module attributes {stable_mosaic.version = 11 : i64} {
  func.func @attack_mlp_kernel(%arg0: i32, %arg1: memref<128x64xf32, #tpu.memory_space<vmem>>, %arg2: memref<32x64xf32, #tpu.memory_space<vmem>>, %arg3: memref<32x1xf32, #tpu.memory_space<vmem>>, %arg4: memref<32x32xf32, #tpu.memory_space<vmem>>, %arg5: memref<32x1xf32, #tpu.memory_space<vmem>>, %arg6: memref<16x32xf32, #tpu.memory_space<vmem>>, %arg7: memref<16x1xf32, #tpu.memory_space<vmem>>, %arg8: memref<2x16xf32, #tpu.memory_space<vmem>>, %arg9: memref<2x1xf32, #tpu.memory_space<vmem>>, %arg10: memref<2x128xf32, #tpu.memory_space<vmem>>) attributes {dimension_semantics = [#tpu.dimension_semantics<parallel>], iteration_bounds = array<i64: 1>, scalar_prefetch = 0 : i64, scratch_operands = 0 : i64, tpu.core_type = #tpu.core_type<tc>, window_params = [{transform_indices = @transform_0, window_bounds = array<i64: 128, 64>}, {pipeline_mode = #tpu.pipeline_mode<synchronous>, transform_indices = @transform_1, window_bounds = array<i64: 32, 64>}, {pipeline_mode = #tpu.pipeline_mode<synchronous>, transform_indices = @transform_2, window_bounds = array<i64: 32, 1>}, {pipeline_mode = #tpu.pipeline_mode<synchronous>, transform_indices = @transform_3, window_bounds = array<i64: 32, 32>}, {pipeline_mode = #tpu.pipeline_mode<synchronous>, transform_indices = @transform_4, window_bounds = array<i64: 32, 1>}, {pipeline_mode = #tpu.pipeline_mode<synchronous>, transform_indices = @transform_5, window_bounds = array<i64: 16, 32>}, {pipeline_mode = #tpu.pipeline_mode<synchronous>, transform_indices = @transform_6, window_bounds = array<i64: 16, 1>}, {pipeline_mode = #tpu.pipeline_mode<synchronous>, transform_indices = @transform_7, window_bounds = array<i64: 2, 16>}, {pipeline_mode = #tpu.pipeline_mode<synchronous>, transform_indices = @transform_8, window_bounds = array<i64: 2, 1>}, {transform_indices = @transform_9, window_bounds = array<i64: 2, 128>}]} {
    %c0 = arith.constant 0 : index
    %c0_0 = arith.constant 0 : index
    %0 = vector.load %arg1[%c0, %c0_0] : memref<128x64xf32, #tpu.memory_space<vmem>>, vector<128x64xf32>
    %c0_1 = arith.constant 0 : index
    %c0_2 = arith.constant 0 : index
    %1 = vector.load %arg2[%c0_1, %c0_2] : memref<32x64xf32, #tpu.memory_space<vmem>>, vector<32x64xf32>
    %cst = arith.constant dense<0.000000e+00> : vector<32x128xf32>
    %2 = tpu.matmul %1, %0, %cst {dimension_numbers = #tpu.dot_dimension_numbers<[1], [1], [0], [0], [0, 0, 1, 0], [], []>} : vector<32x64xf32>, vector<128x64xf32>, vector<32x128xf32> -> vector<32x128xf32>
    %c0_3 = arith.constant 0 : index
    %c0_4 = arith.constant 0 : index
    %3 = vector.load %arg3[%c0_3, %c0_4] : memref<32x1xf32, #tpu.memory_space<vmem>>, vector<32x1xf32>
    %4 = vector.broadcast %3 : vector<32x1xf32> to vector<32x128xf32>
    %5 = arith.addf %2, %4 : vector<32x128xf32>
    %cst_5 = arith.constant 0.000000e+00 : f32
    %6 = vector.broadcast %cst_5 : f32 to vector<32x128xf32>
    %7 = arith.maximumf %5, %6 : vector<32x128xf32>
    %c0_6 = arith.constant 0 : index
    %c0_7 = arith.constant 0 : index
    %8 = vector.load %arg4[%c0_6, %c0_7] : memref<32x32xf32, #tpu.memory_space<vmem>>, vector<32x32xf32>
    %cst_8 = arith.constant dense<0.000000e+00> : vector<32x128xf32>
    %9 = tpu.matmul %8, %7, %cst_8 {dimension_numbers = #tpu.dot_dimension_numbers<[1], [0], [0], [1], [0, 0, 1, 1], [], []>} : vector<32x32xf32>, vector<32x128xf32>, vector<32x128xf32> -> vector<32x128xf32>
    %c0_9 = arith.constant 0 : index
    %c0_10 = arith.constant 0 : index
    %10 = vector.load %arg5[%c0_9, %c0_10] : memref<32x1xf32, #tpu.memory_space<vmem>>, vector<32x1xf32>
    %11 = vector.broadcast %10 : vector<32x1xf32> to vector<32x128xf32>
    %12 = arith.addf %9, %11 : vector<32x128xf32>
    %cst_11 = arith.constant 0.000000e+00 : f32
    %13 = vector.broadcast %cst_11 : f32 to vector<32x128xf32>
    %14 = arith.maximumf %12, %13 : vector<32x128xf32>
    %c0_12 = arith.constant 0 : index
    %c0_13 = arith.constant 0 : index
    %15 = vector.load %arg6[%c0_12, %c0_13] : memref<16x32xf32, #tpu.memory_space<vmem>>, vector<16x32xf32>
    %cst_14 = arith.constant dense<0.000000e+00> : vector<16x128xf32>
    %16 = tpu.matmul %15, %14, %cst_14 {dimension_numbers = #tpu.dot_dimension_numbers<[1], [0], [0], [1], [0, 0, 1, 1], [], []>} : vector<16x32xf32>, vector<32x128xf32>, vector<16x128xf32> -> vector<16x128xf32>
    %c0_15 = arith.constant 0 : index
    %c0_16 = arith.constant 0 : index
    %17 = vector.load %arg7[%c0_15, %c0_16] : memref<16x1xf32, #tpu.memory_space<vmem>>, vector<16x1xf32>
    %18 = vector.broadcast %17 : vector<16x1xf32> to vector<16x128xf32>
    %19 = arith.addf %16, %18 : vector<16x128xf32>
    %cst_17 = arith.constant 0.000000e+00 : f32
    %20 = vector.broadcast %cst_17 : f32 to vector<16x128xf32>
    %21 = arith.maximumf %19, %20 : vector<16x128xf32>
    %c0_18 = arith.constant 0 : index
    %c0_19 = arith.constant 0 : index
    %22 = vector.load %arg8[%c0_18, %c0_19] : memref<2x16xf32, #tpu.memory_space<vmem>>, vector<2x16xf32>
    %cst_20 = arith.constant dense<0.000000e+00> : vector<2x128xf32>
    %23 = tpu.matmul %22, %21, %cst_20 {dimension_numbers = #tpu.dot_dimension_numbers<[1], [0], [0], [1], [0, 0, 1, 1], [], []>} : vector<2x16xf32>, vector<16x128xf32>, vector<2x128xf32> -> vector<2x128xf32>
    %c0_21 = arith.constant 0 : index
    %c0_22 = arith.constant 0 : index
    %24 = vector.load %arg9[%c0_21, %c0_22] : memref<2x1xf32, #tpu.memory_space<vmem>>, vector<2x1xf32>
    %25 = vector.broadcast %24 : vector<2x1xf32> to vector<2x128xf32>
    %26 = arith.addf %23, %25 : vector<2x128xf32>
    %cst_23 = arith.constant 5.000000e-01 : f32
    %27 = vector.broadcast %cst_23 : f32 to vector<2x128xf32>
    %28 = arith.mulf %27, %26 : vector<2x128xf32>
    %29 = math.tanh %28 : vector<2x128xf32>
    %cst_24 = arith.constant 5.000000e-01 : f32
    %30 = vector.broadcast %cst_24 : f32 to vector<2x128xf32>
    %31 = arith.mulf %30, %29 : vector<2x128xf32>
    %cst_25 = arith.constant 5.000000e-01 : f32
    %32 = vector.broadcast %cst_25 : f32 to vector<2x128xf32>
    %33 = arith.addf %31, %32 : vector<2x128xf32>
    %c0_26 = arith.constant 0 : index
    %c0_27 = arith.constant 0 : index
    %34 = vector.load %arg10[%c0_26, %c0_27] : memref<2x128xf32, #tpu.memory_space<vmem>>, vector<2x128xf32>
    tpu.vector_store %arg10[%c0_26, %c0_27], %33 {strides = array<i32>} : memref<2x128xf32, #tpu.memory_space<vmem>>, vector<2x128xf32>,
    return
  }
  func.func @transform_0(%arg0: i32) -> (i32, i32) {
    %c0_i32 = arith.constant 0 : i32
    %c0_i32_0 = arith.constant 0 : i32
    return %arg0, %c0_i32 : i32, i32
  }
  func.func @transform_1(%arg0: i32) -> (i32, i32) {
    %c0_i32 = arith.constant 0 : i32
    %c0_i32_0 = arith.constant 0 : i32
    %c0_i32_1 = arith.constant 0 : i32
    return %c0_i32, %c0_i32_0 : i32, i32
  }
  func.func @transform_2(%arg0: i32) -> (i32, i32) {
    %c0_i32 = arith.constant 0 : i32
    %c0_i32_0 = arith.constant 0 : i32
    %c0_i32_1 = arith.constant 0 : i32
    return %c0_i32, %c0_i32_0 : i32, i32
  }
  func.func @transform_3(%arg0: i32) -> (i32, i32) {
    %c0_i32 = arith.constant 0 : i32
    %c0_i32_0 = arith.constant 0 : i32
    %c0_i32_1 = arith.constant 0 : i32
    return %c0_i32, %c0_i32_0 : i32, i32
  }
  func.func @transform_4(%arg0: i32) -> (i32, i32) {
    %c0_i32 = arith.constant 0 : i32
    %c0_i32_0 = arith.constant 0 : i32
    %c0_i32_1 = arith.constant 0 : i32
    return %c0_i32, %c0_i32_0 : i32, i32
  }
  func.func @transform_5(%arg0: i32) -> (i32, i32) {
    %c0_i32 = arith.constant 0 : i32
    %c0_i32_0 = arith.constant 0 : i32
    %c0_i32_1 = arith.constant 0 : i32
    return %c0_i32, %c0_i32_0 : i32, i32
  }
  func.func @transform_6(%arg0: i32) -> (i32, i32) {
    %c0_i32 = arith.constant 0 : i32
    %c0_i32_0 = arith.constant 0 : i32
    %c0_i32_1 = arith.constant 0 : i32
    return %c0_i32, %c0_i32_0 : i32, i32
  }
  func.func @transform_7(%arg0: i32) -> (i32, i32) {
    %c0_i32 = arith.constant 0 : i32
    %c0_i32_0 = arith.constant 0 : i32
    %c0_i32_1 = arith.constant 0 : i32
    return %c0_i32, %c0_i32_0 : i32, i32
  }
  func.func @transform_8(%arg0: i32) -> (i32, i32) {
    %c0_i32 = arith.constant 0 : i32
    %c0_i32_0 = arith.constant 0 : i32
    %c0_i32_1 = arith.constant 0 : i32
    return %c0_i32, %c0_i32_0 : i32, i32
  }
  func.func @transform_9(%arg0: i32) -> (i32, i32) {
    %c0_i32 = arith.constant 0 : i32
    %c0_i32_0 = arith.constant 0 : i32
    return %c0_i32, %arg0 : i32, i32
  }
}

</mosaic_0001>

<bundles_post_ra>
// kernel: tpu_custom_call.1
= control target key start
LH: loop header
LB: loop body
LE: loop exit
PB: predicated region body
PF: predicated region fallthrough
CT: control target
= control target key end

     0   :  { %vm77_vm0 = vcmask 523264   ;;  %s597_s0 = inlined_call_operand.vmem [shape: f32[128,64], index: 0, kind: input, shape index: {}]   ;;  %s598_s1 = inlined_call_operand.vmem [shape: f32[32,64], index: 1, kind: input, shape index: {}]   ;;  %s599_s2 = inlined_call_operand.vmem [shape: f32[32,1], index: 2, kind: input, shape index: {}]   ;;  %s600_s3 = inlined_call_operand.vmem [shape: f32[32,32], index: 3, kind: input, shape index: {}]   ;;  %s601_s4 = inlined_call_operand.vmem [shape: f32[32,1], index: 4, kind: input, shape index: {}]   ;;  %s602_s5 = inlined_call_operand.vmem [shape: f32[16,32], index: 5, kind: input, shape index: {}]   ;;  %s603_s6 = inlined_call_operand.vmem [shape: f32[16,1], index: 6, kind: input, shape index: {}]   ;;  %s604_s7 = inlined_call_operand.vmem [shape: f32[2,16], index: 7, kind: input, shape index: {}]   ;;  %s605_s8 = inlined_call_operand.vmem [shape: f32[2,1], index: 8, kind: input, shape index: {}]   ;;  %s606_s9 = inlined_call_operand.hbm [shape: f32[2,128], index: 9, kind: output, shape index: {}]  }
   0x1   :  { %v48_v0 = vld [vmem:[%s597_s0 + $0x78] sm:$0xff]  ;;  %v47_v1 = vld [vmem:[%s597_s0 + $0x70] sm:$0xff] }
   0x2   :  { %342 = vmatpush.xpose.msk.msra.mxu0 %vm77_vm0, %v48_v0 }
   0x3   :  { %14 = vsyncpa [#allocation3], 0  ;;  %v46_v2 = vld [vmem:[%s597_s0 + $0x68] sm:$0xff]  ;;  %v45_v3 = vld [vmem:[%s597_s0 + $0x60] sm:$0xff]  ;;  %v402_v11 = vmov 0   ;;  %vm199_vm1 = vcmask 261120  }
   0x4   :  { %v44_v4 = vld [vmem:[%s597_s0 + $0x58] sm:$0xff]  ;;  %v43_v5 = vld [vmem:[%s597_s0 + $0x50] sm:$0xff]  ;;  %v42_v6 = vld [vmem:[%s597_s0 + $0x48] sm:$0xff]  ;;  %372 = vset.pattern.permute.xlu1 %v402_v11  ;;  %371 = vset.pattern.permute.xlu0 %v402_v11  ;;  %vm297_vm2 = vcmask 130048   ;;  %s333_s17 = sshll.u32 %s606_s9, 4  ;;  %s334_s17 = int_to_ptr.hbm [resolvable:$true] %s333_s17 }
   0x5   :  { %v41_v7 = vld [vmem:[%s597_s0 + $0x40] sm:$0xff]  ;;  %v40_v8 = vld [vmem:[%s597_s0 + $0x38] sm:$0xff]  ;;  %v54_v9 = vld [vmem:[%s599_s2 + $0x8] sm:$0xff]  ;;  %373 = vset.pattern.permute.xlu2 %v402_v11 }
   0x6   :  { %343 = vmatpush.xpose.msk.msra.mxu0 %vm77_vm0, %v47_v1  ;;  %v56_v10 = vld [vmem:[%s599_s2 + $0x18] sm:$0xff]  ;;  %v39_v12 = vld [vmem:[%s597_s0 + $0x30] sm:$0xff]  ;;  %64 = vperm.xlu1 %372, %v54_v9   ;;  %v38_v13 = vld [vmem:[%s597_s0 + $0x28] sm:$0xff] }
   0x7   :  { %74 = vperm.xlu0 %371, %v56_v10   ;;  %v53_v14 = vld [vmem:[%s599_s2] sm:$0xff]  ;;  %v55_v15 = vld [vmem:[%s599_s2 + $0x10] sm:$0xff]  ;;  %v36_v17 = vld [vmem:[%s597_s0 + $0x18] sm:$0xff] }
   0x8   :  { %v37_v16 = vld [vmem:[%s597_s0 + $0x20] sm:$0xff]  ;;  %v176_v18 = vld [vmem:[%s601_s4 + $0x8] sm:$0xff]  ;;  %v35_v19 = vld [vmem:[%s597_s0 + $0x10] sm:$0xff] }
   0x9   :  { %v34_v20 = vld [vmem:[%s597_s0 + $0x8] sm:$0xff]  ;;  %v175_v21 = vld [vmem:[%s601_s4] sm:$0xff]  ;;  %v51_v27 = vld [vmem:[%s598_s1 + $0x10] sm:$0xff] }
   0xa   :  { %344 = vmatpush.xpose.msk.msra.mxu0 %vm77_vm0, %v46_v2  ;;  %v247_v22 = vld [vmem:[%s603_s6] sm:$0xff]  ;;  %v50_v26 = vld [vmem:[%s598_s1 + $0x8] sm:$0xff]  ;;  %v52_v28 = vld [vmem:[%s598_s1 + $0x18] sm:$0xff] }
   0xb   :  { %v33_v23 = vld [vmem:[%s597_s0] sm:$0xff]  ;;  %v178_v41 = vld [vmem:[%s601_s4 + $0x18] sm:$0xff]  ;;  %v177_v47 = vld [vmem:[%s601_s4 + $0x10] sm:$0xff] }
   0xc   :  { %v49_v24 = vld [vmem:[%s598_s1] sm:$0xff]  ;;  %196 = vperm.xlu2 %373, %v178_v41   ;;  %v172_v48 = vld [vmem:[%s600_s3 + $0x8] sm:$0xff]  ;;  %v173_v50 = vld [vmem:[%s600_s3 + $0x10] sm:$0xff] }
   0xd   :  { %v291_v25 = vld [vmem:[%s605_s8] sm:$0x3]  ;;  %v248_v49 = vld [vmem:[%s603_s6 + $0x8] sm:$0xff]  ;;  %v174_v51 = vld [vmem:[%s600_s3 + $0x18] sm:$0xff] }
   0xe   :  { %345 = vmatpush.xpose.msk.msra.mxu0 %vm77_vm0, %v45_v3  ;;  %59 = vperm.xlu1 %372, %v53_v14   ;;  %v171_v46 = vld [vmem:[%s600_s3] sm:$0xff] }
   0xf   :  { %69 = vperm.xlu0 %371, %v55_v15   ;;  %v290_v14 = vld [vmem:[%s604_s7] sm:$0x3] }
  0x12   :  { %346 = vmatpush.xpose.msk.msra.mxu0 %vm77_vm0, %v44_v4  ;;  %v245_v4 = vld [vmem:[%s602_s5] sm:$0xff] }
  0x14   :  { %191 = vperm.xlu2 %373, %v177_v47  }
  0x16   :  { %347 = vmatpush.xpose.msk.msra.mxu0 %vm77_vm0, %v43_v5  ;;  %181 = vperm.xlu1 %372, %v175_v21   ;;  %v246_v5 = vld [vmem:[%s602_s5 + $0x8] sm:$0xff]  ;;  %s403_s5 = smov [#allocation2]  }
  0x17   :  { %186 = vperm.xlu0 %371, %v176_v18   ;;  %s331_s14 = sshll.u32 %s403_s5, 4  ;;  %s332_s14 = int_to_ptr.vmem [resolvable:$true] %s331_s14 }
  0x1a   :  { %348 = vmatpush.xpose.msk.msra.mxu0 %vm77_vm0, %v42_v6 }
  0x1c   :  { %256 = vperm.xlu2 %373, %v248_v49  }
  0x1e   :  { %349 = vmatpush.xpose.msk.msra.mxu0 %vm77_vm0, %v41_v7  ;;  %294 = vperm.xlu1 %372, %v291_v25  }
  0x1f   :  { %251 = vperm.xlu0 %371, %v247_v22  }
  0x22   :  { %350 = vmatpush.xpose.msk.msra.mxu0 %vm77_vm0, %v40_v8 }
  0x26   :  { %351 = vmatpush.xpose.msk.msra.mxu0 %vm77_vm0, %v39_v12 }
  0x2a   :  { %352 = vmatpush.xpose.msk.msra.mxu0 %vm77_vm0, %v38_v13 }
  0x2e   :  { %353 = vmatpush.xpose.msk.msra.mxu0 %vm77_vm0, %v37_v16 }
  0x32   :  { %354 = vmatpush.xpose.msk.msra.mxu0 %vm77_vm0, %v36_v17 }
  0x36   :  { %355 = vmatpush.xpose.msk.msra.mxu0 %vm77_vm0, %v35_v19 }
  0x3a   :  { %356 = vmatpush.xpose.msk.msra.mxu0 %vm77_vm0, %v34_v20 }
  0x3e   :  { %357 = vmatpush.xpose.msk.msra.mxu0 %vm77_vm0, %v33_v23 }
  0x41   :  { %358 = vmatmul.msk.f32.vlgmr.msra.gmra.mxu0 %vm77_vm0, %v49_v24 }
  0x49   :  { %359 = vmatmul.msk.f32.gmra.mxu0 %vm77_vm0, %v50_v26 }
  0x51   :  { %360 = vmatmul.msk.f32.gmra.mxu0 %vm77_vm0, %v51_v27 }
  0x59   :  { %361 = vmatmul.msk.f32.gmra.mxu0 %vm77_vm0, %v52_v28 }
  0x66   :  { %v197_v54 = vpop.permute.xlu2 %196 }
  0x6e   :  { %v192_v56 = vpop.permute.xlu2 %191 }
  0x76   :  { %v257_v8 = vpop.permute.xlu2 %256 }
  0x78   :  { %v65_v32 = vpop.permute.xlu1 %64 }
  0x79   :  { %v75_v31 = vpop.permute.xlu0 %74 }
  0x80   :  { %v60_v38 = vpop.permute.xlu1 %59 }
  0x81   :  { %v70_v34 = vpop.permute.xlu0 %69 }
  0x88   :  { %v182_v63 = vpop.permute.xlu1 %181 }
  0x89   :  { %v187_v60 = vpop.permute.xlu0 %186 }
  0x90   :  { %v295_v15 = vpop.permute.xlu1 %294 }
  0x91   :  { %v252_v7 = vpop.permute.xlu0 %251 }
  0xbe   :  { %v155_v29 = vpop.f32.mrf.mxu0 }
  0xbf   :  { %v156_v42 = vadd.f32 %v155_v29, %v60_v38 }
  0xc1   :  { %v167_v45 = vmax.f32 %v156_v42, 0.0 }
  0xc6   :  { %v158_v30 = vpop.f32.mrf.mxu0 }
  0xc7   :  { %v159_v39 = vadd.f32 %v158_v30, %v65_v32 }
  0xc9   :  { %v168_v44 = vmax.f32 %v159_v39, 0.0 }
  0xce   :  { %v161_v33 = vpop.f32.mrf.mxu0 }
  0xcf   :  { %v162_v36 = vadd.f32 %v161_v33, %v70_v34 }
  0xd1   :  { %v169_v43 = vmax.f32 %v162_v36, 0.0 }
  0xd6   :  { %v164_v35 = vpop.f32.mrf.mxu0 }
  0xd7   :  { %v165_v37 = vadd.f32 %v164_v35, %v75_v31 }
  0xd9   :  { %v170_v40 = vmax.f32 %v165_v37, 0.0 }
  0xdb   :  { %224 = vmatpush.msra.mxu1 %v170_v40 }
  0xdd   :  { %225 = vmatpush.msra.mxu1 %v169_v43 }
  0xdf   :  { %226 = vmatpush.msra.mxu1 %v168_v44 }
  0xe1   :  { %227 = vmatpush.msra.mxu1 %v167_v45 }
  0xe2   :  { %362 = vmatmul.msk.f32.vlgmr.msra.gmra.mxu1 %vm199_vm1, %v171_v46 }
  0xea   :  { %363 = vmatmul.msk.f32.gmra.mxu1 %vm199_vm1, %v172_v48 }
  0xf2   :  { %364 = vmatmul.msk.f32.gmra.mxu1 %vm199_vm1, %v173_v50 }
  0xfa   :  { %365 = vmatmul.msk.f32.gmra.mxu1 %vm199_vm1, %v174_v51 }
 0x15f   :  { %v229_v52 = vpop.f32.mrf.mxu1 }
 0x160   :  { %v230_v0 = vadd.f32 %v229_v52, %v182_v63 }
 0x162   :  { %v241_v3 = vmax.f32 %v230_v0, 0.0 }
 0x167   :  { %v232_v53 = vpop.f32.mrf.mxu1 }
 0x168   :  { %v233_v61 = vadd.f32 %v232_v53, %v187_v60 }
 0x16a   :  { %v242_v2 = vmax.f32 %v233_v61, 0.0 }
 0x16f   :  { %v235_v55 = vpop.f32.mrf.mxu1 }
 0x170   :  { %v236_v58 = vadd.f32 %v235_v55, %v192_v56 }
 0x172   :  { %v243_v1 = vmax.f32 %v236_v58, 0.0 }
 0x177   :  { %v238_v57 = vpop.f32.mrf.mxu1 }
 0x178   :  { %v239_v59 = vadd.f32 %v238_v57, %v197_v54 }
 0x17a   :  { %v244_v62 = vmax.f32 %v239_v59, 0.0 }
 0x17c   :  { %277 = vmatpush.msra.mxu2 %v244_v62 }
 0x17e   :  { %278 = vmatpush.msra.mxu2 %v243_v1 }
 0x180   :  { %279 = vmatpush.msra.mxu2 %v242_v2 }
 0x182   :  { %280 = vmatpush.msra.mxu2 %v241_v3 }
 0x183   :  { %366 = vmatmul.msk.f32.vlgmr.msra.gmra.mxu2 %vm199_vm1, %v245_v4 }
 0x18b   :  { %367 = vmatmul.msk.f32.gmra.mxu2 %vm199_vm1, %v246_v5 }
 0x206   :  { %v282_v6 = vpop.f32.mrf.mxu2 }
 0x207   :  { %v283_v10 = vadd.f32 %v282_v6, %v252_v7 }
 0x209   :  { %v288_v13 = vmax.f32 %v283_v10, 0.0 }
 0x20e   :  { %v285_v9 = vpop.f32.mrf.mxu2 }
 0x20f   :  { %v286_v11 = vadd.f32 %v285_v9, %v257_v8 }
 0x211   :  { %v289_v12 = vmax.f32 %v286_v11, 0.0 }
 0x213   :  { %315 = vmatpush.msra.mxu3 %v289_v12 }
 0x215   :  { %316 = vmatpush.msra.mxu3 %v288_v13 }
 0x216   :  { %368 = vmatmul.msk.f32.vlgmr.msra.gmra.mxu3 %vm297_vm2, %v290_v14 }
 0x299   :  { %v318_v16 = vpop.f32.mrf.mxu3 }
 0x29a   :  { %v319_v17 = vadd.f32 %v318_v16, %v295_v15 }
 0x29c   :  { %v321_v18 = vmul.f32 0.5, %v319_v17 }
 0x29e   :  { %374 = vtanh.f32 %v321_v18 }
 0x2a4   :  { %v375_v19 = vpop.eup %374 }
 0x2a5   :  { %v323_v20 = vmul.f32 0.5, %v375_v19 }
 0x2a7   :  { %v324_v21 = vadd.f32 0.5, %v323_v20 }
 0x2a9   :  { %325 = vst [vmem:[#allocation2] sm:$0x3] %v324_v21 }
 0x2aa   :  { %336 = dma.vmem_to_hbm [thread:$0]  %s332_s14, 32, %s334_s17, [#allocation3]  }
 0x2ab   :  { %400 = dma.done.wait [#allocation3], 32  }
 0x2ac   :  { %401 = vsyncadd [#allocation3], 4294967264 }
 0x2ad   :  { %341 = vsyncpa [#allocation3], 1 }

</bundles_post_ra>
